<compile_context>
chip_gen: v7x
topology: tpu7x:2x2x1
jax: 0.10.0
libtpu: 0.0.40
codegen_flags: <defaults>
</compile_context>

<pallas_src>
import math
import jax
import jax.numpy as jnp
from jax.experimental import pallas as pl
from jax.experimental.pallas import tpu as pltpu


def _round_up(x, m):
    return ((x + m - 1) // m) * m


def _gemm_relu_kernel(x_ref, w_ref, o_ref, acc_ref):
    """im2col GEMM with fused ReLU.

    x_ref  : (TM, TK)  im2col activation tile (lane-dense K)
    w_ref  : (TK, TN)  reshaped conv weight tile (lane-dense C_out)
    o_ref  : (TM, TN)  output tile (lane-dense)
    acc_ref: (TM, TN)  f32 VMEM accumulator, persists across the K grid axis
    """
    @pl.when(pl.program_id(2) == 0)
    def _():
        acc_ref[...] = jnp.zeros_like(acc_ref)

    acc_ref[...] += jnp.dot(x_ref[...], w_ref[...],
                            preferred_element_type=jnp.float32)

    @pl.when(pl.program_id(2) == pl.num_programs(2) - 1)
    def _():
        # Fused ReLU (post-norm path of the module, activation='relu').
        o_ref[...] = jnp.maximum(acc_ref[...], 0.0).astype(o_ref.dtype)


def convolution_forward(x_nchw, weight, strides=(1, 1), compute_dtype=None):
    """Forward pass of tensormonk Convolution (default args) on TPU.

    x_nchw : (N, C_in, H, W)              float32
    weight : (C_out, C_in, KH, KW)        PyTorch conv weight layout
    strides: (sh, sw), default (1, 1)
    compute_dtype: optional (e.g. jnp.bfloat16) for the matmul operands;
        accumulation stays in float32.
    returns: (N, C_out, H_out, W_out)  with PyTorch padding = (KH//2, KW//2).
    """
    N, C_in, H, W = x_nchw.shape
    C_out, C_in_w, KH, KW = weight.shape
    assert C_in == C_in_w
    sh, sw = strides

    # PyTorch 'pad=True' semantics: symmetric padding of exactly (KH//2, KW//2)
    # (matches nn.Conv2d for any kernel size, not lax "SAME").
    pad_h, pad_w = KH // 2, KW // 2
    H_out = (H + 2 * pad_h - KH) // sh + 1
    W_out = (W + 2 * pad_w - KW) // sw + 1

    # ---- wrapper-side layout + im2col (NCHW -> NHWC -> [M, K] slab) ----
    x_nhwc = jnp.transpose(x_nchw, (0, 2, 3, 1))
    x_pad = jnp.pad(x_nhwc, ((0, 0), (pad_h, pad_h), (pad_w, pad_w), (0, 0)))

    cols = []
    for kh in range(KH):
        for kw in range(KW):
            cols.append(x_pad[:,
                              kh:kh + (H_out - 1) * sh + 1:sh,
                              kw:kw + (W_out - 1) * sw + 1:sw,
                              :])
    # patches[n, h, w, (kh*KW + kw)*C_in + c] = x_pad[n, h*sh+kh, w*sw+kw, c]
    patches = jnp.concatenate(cols, axis=-1)

    M = N * H_out * W_out
    K = KH * KW * C_in
    lhs = patches.reshape(M, K)
    # weight[(kh*KW + kw)*C_in + c_in, c_out]
    rhs = jnp.transpose(weight, (2, 3, 1, 0)).reshape(K, C_out)

    if compute_dtype is not None:
        lhs = lhs.astype(compute_dtype)
        rhs = rhs.astype(compute_dtype)

    # ---- lane-dense padding + tile sizes ----
    Kp = _round_up(K, 128)                 # lane-dense contraction dim
    Coutp = _round_up(C_out, 128)          # lane-dense output channels
    TM = 256 if M >= 256 else _round_up(M, 8)
    Mp = _round_up(M, TM)
    TN = 256 if Coutp % 256 == 0 else 128
    TK = 512 if Kp % 512 == 0 else (256 if Kp % 256 == 0 else 128)

    lhs = jnp.pad(lhs, ((0, Mp - M), (0, Kp - K)))
    rhs = jnp.pad(rhs, ((0, Kp - K), (0, Coutp - C_out)))

    out2d = pl.pallas_call(
        _gemm_relu_kernel,
        out_shape=jax.ShapeDtypeStruct((Mp, Coutp), x_nchw.dtype),
        grid_spec=pltpu.PrefetchScalarGridSpec(
            num_scalar_prefetch=0,
            grid=(Mp // TM, Coutp // TN, Kp // TK),
            in_specs=[
                pl.BlockSpec((TM, TK), lambda i, j, k: (i, k)),
                pl.BlockSpec((TK, TN), lambda i, j, k: (k, j)),
            ],
            out_specs=pl.BlockSpec((TM, TN), lambda i, j, k: (i, j)),
            scratch_shapes=[pltpu.VMEM((TM, TN), jnp.float32)],
        ),
        compiler_params=pltpu.CompilerParams(
            dimension_semantics=("parallel", "parallel", "arbitrary"),
            vmem_limit_bytes=32 * 1024 * 1024,
        ),
    )(lhs, rhs)

    # ---- strip padding + back to NCHW to match the PyTorch module ----
    out = out2d[:M, :C_out].reshape(N, H_out, W_out, C_out)
    return jnp.transpose(out, (0, 3, 1, 2))


def init_conv_weight(key, out_channels, in_channels, kh, kw):
    """Deterministic kaiming_normal_ init (gain('conv2d') == 1):
    std = 1 / sqrt(fan_in), fan_in = in_channels * kh * kw."""
    fan_in = in_channels * kh * kw
    std = 1.0 / math.sqrt(fan_in)
    return std * jax.random.normal(
        key, (out_channels, in_channels, kh, kw), dtype=jnp.float32)


if __name__ == "__main__":
    # Module config mirrored here:
    #   Convolution(tensor_size=(2, 4, 16, 16), filter_size=3, out_channels=8)
    N, C_in, H, W = 2, 4, 16, 16
    C_out, KH, KW = 8, 3, 3

    key = jax.random.PRNGKey(0)
    kx, kw_ = jax.random.split(key)
    x = jax.random.normal(kx, (N, C_in, H, W), dtype=jnp.float32)
    weight = init_conv_weight(kw_, C_out, C_in, KH, KW)

    out = convolution_forward(x, weight)
    out = jax.block_until_ready(out)

    # Reference: explicit PyTorch-style padding (KH//2, KW//2) + ReLU.
    pad_h, pad_w = KH // 2, KW // 2
    ref = jax.lax.conv_general_dilated(
        x, weight, window_strides=(1, 1),
        padding=((pad_h, pad_h), (pad_w, pad_w)),
        dimension_numbers=("NCHW", "OIHW", "NCHW"))
    ref = jnp.maximum(ref, 0.0)

    assert out.shape == ref.shape == (N, C_out, H, W)
    assert jnp.allclose(out, ref, atol=1e-4, rtol=1e-4)

    print("KERNEL_OK")
</pallas_src>

<mosaic_0001>
module attributes {stable_mosaic.version = 11 : i64} {
  func.func @_gemm_relu_kernel(%arg0: i32, %arg1: i32, %arg2: i32, %arg3: memref<256x128xf32, #tpu.memory_space<vmem>>, %arg4: memref<128x128xf32, #tpu.memory_space<vmem>>, %arg5: memref<256x128xf32, #tpu.memory_space<vmem>>, %arg6: memref<256x128xf32, #tpu.memory_space<vmem>>) attributes {dimension_semantics = [#tpu.dimension_semantics<parallel>, #tpu.dimension_semantics<parallel>, #tpu.dimension_semantics<arbitrary>], iteration_bounds = array<i64: 2, 1, 1>, scalar_prefetch = 0 : i64, scratch_operands = 1 : i64, tpu.core_type = #tpu.core_type<tc>, window_params = [{transform_indices = @transform_0, window_bounds = array<i64: 256, 128>}, {transform_indices = @transform_1, window_bounds = array<i64: 128, 128>}, {transform_indices = @transform_2, window_bounds = array<i64: 256, 128>}]} {
    %c0_i32 = arith.constant 0 : i32
    %0 = arith.cmpi eq, %arg2, %c0_i32 : i32
    %1 = arith.extui %0 : i1 to i32
    %c0_i32_0 = arith.constant 0 : i32
    %2 = arith.cmpi ne, %1, %c0_i32_0 : i32
    scf.if %2 {
      %cst_10 = arith.constant 0.000000e+00 : f32
      %12 = vector.broadcast %cst_10 : f32 to vector<256x128xf32>
      %c0_11 = arith.constant 0 : index
      %c0_12 = arith.constant 0 : index
      %13 = vector.load %arg6[%c0_11, %c0_12] : memref<256x128xf32, #tpu.memory_space<vmem>>, vector<256x128xf32>
      tpu.vector_store %arg6[%c0_11, %c0_12], %12 {strides = array<i32>} : memref<256x128xf32, #tpu.memory_space<vmem>>, vector<256x128xf32>,
    } else {
    }
    %c0 = arith.constant 0 : index
    %c0_1 = arith.constant 0 : index
    %3 = vector.load %arg6[%c0, %c0_1] : memref<256x128xf32, #tpu.memory_space<vmem>>, vector<256x128xf32>
    %c0_2 = arith.constant 0 : index
    %c0_3 = arith.constant 0 : index
    %4 = vector.load %arg3[%c0_2, %c0_3] : memref<256x128xf32, #tpu.memory_space<vmem>>, vector<256x128xf32>
    %c0_4 = arith.constant 0 : index
    %c0_5 = arith.constant 0 : index
    %5 = vector.load %arg4[%c0_4, %c0_5] : memref<128x128xf32, #tpu.memory_space<vmem>>, vector<128x128xf32>
    %cst = arith.constant dense<0.000000e+00> : vector<256x128xf32>
    %6 = tpu.matmul %4, %5, %cst {dimension_numbers = #tpu.dot_dimension_numbers<[1], [0], [0], [1], [0, 0, 1, 1], [], []>} : vector<256x128xf32>, vector<128x128xf32>, vector<256x128xf32> -> vector<256x128xf32>
    %7 = arith.addf %3, %6 : vector<256x128xf32>
    %c0_6 = arith.constant 0 : index
    %c0_7 = arith.constant 0 : index
    %8 = vector.load %arg6[%c0_6, %c0_7] : memref<256x128xf32, #tpu.memory_space<vmem>>, vector<256x128xf32>
    tpu.vector_store %arg6[%c0_6, %c0_7], %7 {strides = array<i32>} : memref<256x128xf32, #tpu.memory_space<vmem>>, vector<256x128xf32>,
    %c0_i32_8 = arith.constant 0 : i32
    %9 = arith.cmpi eq, %arg2, %c0_i32_8 : i32
    %10 = arith.extui %9 : i1 to i32
    %c0_i32_9 = arith.constant 0 : i32
    %11 = arith.cmpi ne, %10, %c0_i32_9 : i32
    scf.if %11 {
      %c0_10 = arith.constant 0 : index
      %c0_11 = arith.constant 0 : index
      %12 = vector.load %arg6[%c0_10, %c0_11] : memref<256x128xf32, #tpu.memory_space<vmem>>, vector<256x128xf32>
      %cst_12 = arith.constant 0.000000e+00 : f32
      %13 = vector.broadcast %cst_12 : f32 to vector<256x128xf32>
      %14 = arith.maximumf %12, %13 : vector<256x128xf32>
      %c0_13 = arith.constant 0 : index
      %c0_14 = arith.constant 0 : index
      %15 = vector.load %arg5[%c0_13, %c0_14] : memref<256x128xf32, #tpu.memory_space<vmem>>, vector<256x128xf32>
      tpu.vector_store %arg5[%c0_13, %c0_14], %14 {strides = array<i32>} : memref<256x128xf32, #tpu.memory_space<vmem>>, vector<256x128xf32>,
    } else {
    }
    return
  }
  func.func @transform_0(%arg0: i32, %arg1: i32, %arg2: i32) -> (i32, i32) {
    %c0_i32 = arith.constant 0 : i32
    return %arg0, %arg2 : i32, i32
  }
  func.func @transform_1(%arg0: i32, %arg1: i32, %arg2: i32) -> (i32, i32) {
    %c0_i32 = arith.constant 0 : i32
    return %arg2, %arg1 : i32, i32
  }
  func.func @transform_2(%arg0: i32, %arg1: i32, %arg2: i32) -> (i32, i32) {
    %c0_i32 = arith.constant 0 : i32
    return %arg0, %arg1 : i32, i32
  }
}

</mosaic_0001>

<bundles_post_ra>
// kernel: tpu_custom_call.1
= control target key start
LH: loop header
LB: loop body
LE: loop exit
PB: predicated region body
PF: predicated region fallthrough
CT: control target
= control target key end

     0   :  { %7 = vsyncpa [#allocation4], 0  ;;  %s1574_s0 = inlined_call_operand.hbm [shape: f32[512,128], index: 0, kind: input, shape index: {}]   ;;  %s1575_s1 = inlined_call_operand.hbm [shape: f32[128,128], index: 1, kind: input, shape index: {}]   ;;  %s1576_s2 = inlined_call_operand.hbm [shape: f32[512,128], index: 2, kind: output, shape index: {}]  }
   0x1   :  { %9 = vsyncpa [#allocation4 + $0x1], 0 }
   0x2   :  { %10 = vsyncpa [#allocation7], 0 }
   0x3   :  { %11 = vsyncpa [#allocation5], 0 }
   0x4   :  { %13 = vsyncpa [#allocation5 + $0x1], 0  ;;  %s1276_s9 = smov 0   ;;  %s1278_s10 = smov 0  }
   0x5   :  { %s1280_s11 = smov 0   ;;  %s1282_s12 = smov 0  }
   0x6   :  { %s1284_s13 = smov 0   ;;  %s1286_s14 = smov 0  }
   0x7 LB: > { %s836_s15 = sadd.s32 4294967295, %s1252_s14   ;;  %s837_s16 = sadd.s32 4294967294, %s1252_s14   ;;  %s1252_s14 = sphi %s1286_s14, %s19_s14   ;;  %s1248_s13 = sphi %s1284_s13, %s1600_s13   ;;  %s1244_s12 = sphi %s1282_s12, %s1599_s12   ;;  %s1240_s11 = sphi %s1280_s11, %s1598_s11   ;;  %s1236_s10 = sphi %s1278_s10, %s1597_s10   ;;  %s1232_s9 = sphi %s1276_s9, %s1596_s9  }
   0x8   : > { %p60_p0 = scmp.ne.s32.totalorder %s1236_s10, %s1232_s9  ;;  %p1310_p1 = scmp.eq.s32.totalorder %s836_s15, 0 }
   0x9   : > { %p1314_p2 = scmp.eq.s32.totalorder %s836_s15, 1  ;;  %p120_p3 = scmp.eq.s32.totalorder %s837_s16, 1 }
   0xa   : > { %s1581_s17 = scalar_select %p1310_p1, 1, 0 }
   0xb   : > { %s1582_s18 = scalar_select %p1314_p2, 1, 0 }
   0xc   : > { %p1320_p4 = por %p1310_p1, %p60_p0  ;;  %p838_p5 = scmp.ge.s32.totalorder %s1252_s14, 1 }
   0xd   : > { %p1325_p6 = por %p120_p3, %p60_p0  ;;  %p127_p7 = scmp.lt.s32.totalorder %s1252_s14, 3 }
   0xe   : > { %s1583_s19 = scalar_select %p1320_p4, 1, 0 }
   0xf   : > { %s1584_s20 = scalar_select %p1325_p6, 1, 0 }
  0x10   : > { %p1330_p8 = pnand %p838_p5, %p127_p7  ;;  %s1254_s22 = smov [#allocation6]  }
  0x11   : > { %s143_s23 = sshll.u32 %s1254_s22, 4  ;;  %s38_s25 = sadd.s32 1, %s1248_s13  ;;  %s144_s23 = int_to_ptr.vmem [resolvable:$true] %s143_s23 }
  0x12   : > { %s1585_s21 = scalar_select %p1330_p8, 1, 0 }
  0x13   : > { %p1039_p9 = pneg %p1330_p8  ;;  %s1108_s28 = scalar_lea.hbm %s1575_s1, 2048 }
  0x14   : > { %p1109_p12 = scmp.ne.s32.totalorder %s1575_s1, %s1108_s28  ;;  %p1115_p5 = scmp.lt.u32.totalorder %s1108_s28, %s1575_s1 }
  0x15   : > { %p1339_p11 = pnand %p1039_p9, %p1310_p1 }
  0x17   : > { %p1110_p13 = pneg %p1339_p11 }
  0x19   : > { %p1111_p0 = pnand %p1110_p13, %p1109_p12 }
  0x1b   : > { %p1112_p3 = pneg %p1111_p0 }
  0x1d   : > { %p1117_p7 = pnand %p1115_p5, %p1112_p3 }
  0x1f   : > { %1120 = shalt.err (!%p1117_p7)
}
  0x20   : > { %s1121_s5 = scalar_lea.vmem %s144_s23, 2048  ;;  %p1129_p1 = scmp.lt.s32.totalorder %s144_s23, %s144_s23 }
  0x21   : > { %p1122_p9 = scmp.ne.s32.totalorder %s144_s23, %s1121_s5  ;;  %p1130_p4 = scmp.lt.s32.totalorder %s1121_s5, %s1121_s5 }
  0x23   : > { %p1124_p10 = pnand %p1122_p9, %p1110_p13  ;;  %p1131_p8 = por %p1130_p4, %p1129_p1 }
  0x25   : > { %p1125_p6 = pneg %p1124_p10 }
  0x27   : > { %p1132_p2 = pnand %p1131_p8, %p1125_p6 }
  0x29   : > { %1135 = shalt.err (!%p1132_p2)
}
  0x2a   : > { %s1255_s6 = smov 128   ;;  %s1256_s7 = smov 8  }
  0x2b   : > { %1042 = dma.hbm_to_vmem [thread:$0]  (!%p1339_p11), %s1575_s1, 2048, %s144_s23, [#allocation7], %s1255_s6, %s1255_s6, %s1256_s7  }
  0x2c   : > { %p40_p1 = scmp.ge.s32.totalorder %s38_s25, 2  ;;  %s47_s16 = sadd.s32 1, %s1240_s11 }
  0x2d   : > { %p54_p2 = scmp.ne.s32.totalorder %s1240_s11, %s1236_s10  ;;  %p55_p4 = scmp.eq.s32.totalorder %s1252_s14, 0 }
  0x2e   : > { %s1602_s25 = smov (%p40_p1, %s38_s25), 0  ;;  %p1588_p8 = scmp.ne.s32.totalorder %s1582_s18, 0 }
  0x2f   : > { %p1369_p6 = por %p55_p4, %p54_p2  ;;  %s42_s26 = ssub.s32 %s1248_s13, %s1602_s25 }
  0x30   : > { %p1375_p10 = por %p1588_p8, %p54_p2  ;;  %p1052_p12 = scmp.lt.s32.totalorder %s1252_s14, 2 }
  0x31   : > { %p45_p11 = scmp.eq.s32.totalorder %s42_s26, 0  ;;  %s157_s23 = sand.u32 1, %s1240_s11  }
  0x32   : > { %s841_s27 = sshll.u32 %s157_s23, 8  ;;  %s853_s29 = sshll.u32 %s1248_s13, 12 }
  0x33   : > { %s1384_s28 = scalar_select %p45_p11, %s1240_s11, %s47_s16  }
  0x34   : > { %s1390_s4 = scalar_lea.hbm %s1574_s0, %s853_s29  ;;  %s161_s18 = scalar_lea.vmem [#allocation3], %s841_s27 }
  0x35   : > { %s169_s5 = sshll.u32 %s161_s18, 4  ;;  %p1396_p13 = pnand %p1052_p12, %p1369_p6  ;;  %s1392_s5 = int_to_ptr.vmem [resolvable:$true] %s169_s5 }
  0x36   : > { %s1400_s15 = scalar_lea.sflag [#allocation4], %s157_s23  ;;  %s1136_s16 = scalar_lea.hbm %s1390_s4, 4096 }
  0x37   : > { %p1137_p0 = scmp.ne.s32.totalorder %s1390_s4, %s1136_s16  ;;  %p1138_p3 = pneg %p1396_p13 }
  0x38   : > { %s1141_s22 = scalar_lea.hbm %s1574_s0, 8192  ;;  %p1142_p9 = scmp.lt.u32.totalorder %s1390_s4, %s1574_s0 }
  0x39   : > { %p1139_p5 = pnand %p1138_p3, %p1137_p0  ;;  %p1143_p1 = scmp.lt.u32.totalorder %s1141_s22, %s1136_s16 }
  0x3a   : > { %p1145_p4 = scmp.lt.u32.totalorder %s1136_s16, %s1390_s4 }
  0x3b   : > { %p1140_p7 = pneg %p1139_p5  ;;  %p1144_p2 = por %p1143_p1, %p1142_p9 }
  0x3d   : > { %p1146_p6 = por %p1145_p4, %p1144_p2 }
  0x3f   : > { %p1147_p8 = pnand %p1146_p6, %p1140_p7 }
  0x41   : > { %1150 = shalt.err (!%p1147_p8)
}
  0x42   : > { %s1151_s23 = scalar_lea.vmem %s1392_s5, 4096  ;;  %s1257_s3 = smov [#allocation3]  }
  0x43   : > { %p1152_p12 = scmp.ne.s32.totalorder %s1392_s5, %s1151_s23  ;;  %s1156_s18 = sshll.u32 %s1257_s3, 4  ;;  %s1157_s18 = int_to_ptr.vmem [resolvable:$false] %s1156_s18 }
  0x44   : > { %s1158_s26 = scalar_lea.vmem %s1157_s18, 8192  ;;  %p1159_p5 = scmp.lt.s32.totalorder %s1392_s5, %s1157_s18 }
  0x45   : > { %p1154_p11 = pnand %p1152_p12, %p1138_p3  ;;  %p1160_p9 = scmp.lt.s32.totalorder %s1158_s26, %s1151_s23 }
  0x47   : > { %p1155_p0 = pneg %p1154_p11  ;;  %p1161_p1 = por %p1160_p9, %p1159_p5 }
  0x49   : > { %p1162_p2 = pnand %p1161_p1, %p1155_p0 }
  0x4b   : > { %1165 = shalt.err (!%p1162_p2)
}
  0x4c   : > { %1046 = dma.hbm_to_vmem [thread:$0]  (!%p1396_p13), %s1390_s4, 4096, %s1392_s5, %s1400_s15, %s1255_s6, %s1255_s6, %s1256_s7  }
  0x4d   : > { %p1591_p3 = scmp.ne.s32.totalorder %s1585_s21, 0 }
  0x4e   : > { %s1434_s16 = sand.u32 (!%p1591_p3), 1, %s1236_s10   ;;  %p1592_p7 = scmp.ne.s32.totalorder (!%p1591_p3), %s1583_s19, 0 }
  0x4f   : > { %181 = sbr.rel (%p1591_p3) target bundleno = 383 (0x17f), region = 28  ;;  %s845_s27 = sshll.u32 (!%p1591_p3), %s1434_s16, 8 }
  0x50   : > { %s184_s22 = scalar_lea.sflag (!%p1591_p3), [#allocation4], %s1434_s16  ;;  %s1440_s8 = scalar_lea.vmem (!%p1591_p3), [#allocation3], %s845_s27 }
  0x56   : > { %1219 = dma.done.wait (%p1592_p7), %s184_s22, 4096  }
  0x57   : > { %1221 = vsyncadd (%p1592_p7), %s184_s22, 4294963200  ;;  %p1593_p13 = scmp.ne.s32.totalorder %s1581_s17, 0 }
  0x59   : > { %1223 = dma.done.wait (%p1593_p13), [#allocation7], 2048  }
  0x5a   : > { %1225 = vsyncadd (%p1593_p13), [#allocation7], 4294965248  ;;  %v315_v0 = vld [vmem:[#allocation6] sm:$0xff]  ;;  %v316_v1 = vld [vmem:[#allocation6 + $0x8] sm:$0xff]  ;;  %s1484_s17 = scalar_lea.vmem [#allocation8], %s845_s27  ;;  %s854_s19 = sshll.u32 %s1244_s12, 12 }
  0x5b   : > { %v317_v2 = vld [vmem:[#allocation6 + $0x10] sm:$0xff]  ;;  %v983_v3 = vpack.c.bf16 %v316_v1, %v315_v0  ;;  %v318_v4 = vld [vmem:[#allocation6 + $0x18] sm:$0xff]  ;;  %v319_v6 = vld [vmem:[#allocation6 + $0x20] sm:$0xff]  ;;  %s734_s21 = sshll.u32 %s1484_s17, 4  ;;  %s1519_s12 = scalar_lea.hbm %s1576_s2, %s854_s19  ;;  %s1521_s21 = int_to_ptr.vmem [resolvable:$true] %s734_s21 }
  0x5c   : > { %v987_v5 = vpack.c.bf16 %v318_v4, %v317_v2  ;;  %v320_v7 = vld [vmem:[#allocation6 + $0x28] sm:$0xff]  ;;  %v283_v9 = vld [vmem:[%s1440_s8] sm:$0xff]  ;;  %v321_v11 = vld [vmem:[#allocation6 + $0x30] sm:$0xff]  ;;  %s720_s4 = scalar_lea.sflag [#allocation5], %s1434_s16  ;;  %s1166_s5 = scalar_lea.vmem %s1521_s21, 4096 }
  0x5d   : > { %984 = vmatprep.subr.bf16.mxu0 %v983_v3  ;;  %1015 = vmatprep.subr.bf16.mxu1 %v983_v3  ;;  %v991_v8 = vpack.c.bf16 %v320_v7, %v319_v6  ;;  %v299_v10 = vld [vmem:[%s1440_s8 + $0x80] sm:$0xff]  ;;  %v322_v12 = vld [vmem:[#allocation6 + $0x38] sm:$0xff]  ;;  %v324_v15 = vld [vmem:[#allocation6 + $0x48] sm:$0xff]  ;;  %p1167_p4 = scmp.ne.s32.totalorder %s1521_s21, %s1166_s5  ;;  %s1258_s15 = smov [#allocation8]  }
  0x5e   : > { %986 = vmatpush3.bf16.msra.mxu0 %v983_v3  ;;  %1023 = vmatpush3.bf16.msra.mxu1 %v983_v3  ;;  %v995_v13 = vpack.c.bf16 %v322_v12, %v321_v11  ;;  %v323_v14 = vld [vmem:[#allocation6 + $0x40] sm:$0xff]  ;;  %v325_v17 = vld [vmem:[#allocation6 + $0x50] sm:$0xff]  ;;  %v326_v18 = vld [vmem:[#allocation6 + $0x58] sm:$0xff]  ;;  %s1170_s29 = sshll.u32 %s1258_s15, 4  ;;  %s1171_s29 = int_to_ptr.vmem [resolvable:$false] %s1170_s29 }
  0x5f   : > { %988 = vmatprep.subr.bf16.mxu0 %v987_v5  ;;  %1016 = vmatprep.subr.bf16.mxu1 %v987_v5  ;;  %v999_v16 = vpack.c.bf16 %v324_v15, %v323_v14  ;;  %v1003_v19 = vpack.c.bf16 %v326_v18, %v325_v17  ;;  %v327_v20 = vld [vmem:[#allocation6 + $0x60] sm:$0xff]  ;;  %v328_v21 = vld [vmem:[#allocation6 + $0x68] sm:$0xff]  ;;  %v329_v23 = vld [vmem:[#allocation6 + $0x70] sm:$0xff]  ;;  %p1168_p6 = pnand %p1167_p4, %p1375_p10  ;;  %s1172_s30 = scalar_lea.vmem %s1171_s29, 8192 }
  0x60   : > { %935 = vmatprep.mubr.f32.mxu0 %v283_v9  ;;  %959 = vmatprep.mubr.f32.mxu1 %v299_v10  ;;  %v1007_v22 = vpack.c.bf16 %v328_v21, %v327_v20  ;;  %v330_v24 = vld [vmem:[#allocation6 + $0x78] sm:$0xff]  ;;  %v284_v26 = vld [vmem:[%s1440_s8 + $0x8] sm:$0xff]  ;;  %v285_v28 = vld [vmem:[%s1440_s8 + $0x10] sm:$0xff]  ;;  %p1173_p12 = scmp.lt.s32.totalorder %s1521_s21, %s1171_s29  ;;  %p1174_p11 = scmp.lt.s32.totalorder %s1172_s30, %s1166_s5 }
  0x61   : > { %v1011_v25 = vpack.c.bf16 %v330_v24, %v329_v23  ;;  %v300_v27 = vld [vmem:[%s1440_s8 + $0x88] sm:$0xff]  ;;  %v301_v29 = vld [vmem:[%s1440_s8 + $0x90] sm:$0xff]  ;;  %v286_v30 = vld [vmem:[%s1440_s8 + $0x18] sm:$0xff]  ;;  %p1169_p8 = pneg %p1168_p6 }
  0x62   : > { %990 = vmatpush3.bf16.msra.mxu0 %v987_v5  ;;  %1024 = vmatpush3.bf16.msra.mxu1 %v987_v5  ;;  %v302_v31 = vld [vmem:[%s1440_s8 + $0x98] sm:$0xff]  ;;  %v287_v32 = vld [vmem:[%s1440_s8 + $0x20] sm:$0xff]  ;;  %v288_v34 = vld [vmem:[%s1440_s8 + $0x28] sm:$0xff]  ;;  %p1175_p0 = por %p1174_p11, %p1173_p12 }
  0x63   : > { %992 = vmatprep.subr.bf16.mxu0 %v991_v8  ;;  %1017 = vmatprep.subr.bf16.mxu1 %v991_v8  ;;  %v303_v33 = vld [vmem:[%s1440_s8 + $0xa0] sm:$0xff]  ;;  %v304_v35 = vld [vmem:[%s1440_s8 + $0xa8] sm:$0xff]  ;;  %v289_v36 = vld [vmem:[%s1440_s8 + $0x30] sm:$0xff] }
  0x64   : > { %v305_v37 = vld [vmem:[%s1440_s8 + $0xb0] sm:$0xff]  ;;  %v290_v38 = vld [vmem:[%s1440_s8 + $0x38] sm:$0xff]  ;;  %v291_v40 = vld [vmem:[%s1440_s8 + $0x40] sm:$0xff]  ;;  %p1176_p5 = pnand %p1175_p0, %p1169_p8 }
  0x65   : > { %v306_v39 = vld [vmem:[%s1440_s8 + $0xb8] sm:$0xff]  ;;  %v307_v41 = vld [vmem:[%s1440_s8 + $0xc0] sm:$0xff]  ;;  %v292_v42 = vld [vmem:[%s1440_s8 + $0x48] sm:$0xff] }
  0x66   : > { %994 = vmatpush3.bf16.msra.mxu0 %v991_v8  ;;  %1025 = vmatpush3.bf16.msra.mxu1 %v991_v8  ;;  %v308_v43 = vld [vmem:[%s1440_s8 + $0xc8] sm:$0xff]  ;;  %v293_v44 = vld [vmem:[%s1440_s8 + $0x50] sm:$0xff]  ;;  %v294_v46 = vld [vmem:[%s1440_s8 + $0x58] sm:$0xff] }
  0x67   : > { %996 = vmatprep.subr.bf16.mxu0 %v995_v13  ;;  %1018 = vmatprep.subr.bf16.mxu1 %v995_v13  ;;  %v309_v45 = vld [vmem:[%s1440_s8 + $0xd0] sm:$0xff]  ;;  %v310_v47 = vld [vmem:[%s1440_s8 + $0xd8] sm:$0xff]  ;;  %v295_v48 = vld [vmem:[%s1440_s8 + $0x60] sm:$0xff] }
  0x68   : > { %v311_v49 = vld [vmem:[%s1440_s8 + $0xe0] sm:$0xff]  ;;  %v296_v50 = vld [vmem:[%s1440_s8 + $0x68] sm:$0xff]  ;;  %v297_v52 = vld [vmem:[%s1440_s8 + $0x70] sm:$0xff] }
  0x69   : > { %v312_v51 = vld [vmem:[%s1440_s8 + $0xe8] sm:$0xff]  ;;  %v313_v53 = vld [vmem:[%s1440_s8 + $0xf0] sm:$0xff]  ;;  %v298_v54 = vld [vmem:[%s1440_s8 + $0x78] sm:$0xff] }
  0x6a   : > { %998 = vmatpush3.bf16.msra.mxu0 %v995_v13  ;;  %1026 = vmatpush3.bf16.msra.mxu1 %v995_v13  ;;  %v314_v55 = vld [vmem:[%s1440_s8 + $0xf8] sm:$0xff] }
  0x6b   : > { %1000 = vmatprep.subr.bf16.mxu0 %v999_v16  ;;  %1019 = vmatprep.subr.bf16.mxu1 %v999_v16 }
  0x6e   : > { %1002 = vmatpush3.bf16.msra.mxu0 %v999_v16  ;;  %1027 = vmatpush3.bf16.msra.mxu1 %v999_v16 }
  0x6f   : > { %1004 = vmatprep.subr.bf16.mxu0 %v1003_v19  ;;  %1020 = vmatprep.subr.bf16.mxu1 %v1003_v19 }
  0x72   : > { %1006 = vmatpush3.bf16.msra.mxu0 %v1003_v19  ;;  %1028 = vmatpush3.bf16.msra.mxu1 %v1003_v19 }
  0x73   : > { %1008 = vmatprep.subr.bf16.mxu0 %v1007_v22  ;;  %1021 = vmatprep.subr.bf16.mxu1 %v1007_v22 }
  0x76   : > { %1010 = vmatpush3.bf16.msra.mxu0 %v1007_v22  ;;  %1029 = vmatpush3.bf16.msra.mxu1 %v1007_v22 }
  0x77   : > { %1012 = vmatprep.subr.bf16.mxu0 %v1011_v25  ;;  %1022 = vmatprep.subr.bf16.mxu1 %v1011_v25 }
  0x7a   : > { %1014 = vmatpush3.bf16.msra.mxu0 %v1011_v25  ;;  %1030 = vmatpush3.bf16.msra.mxu1 %v1011_v25 }
  0x7d   : > { %936 = vmatmul.mubr.f32.vlgmr.msra.gmra.mrb[0].mxu0 %v284_v26  ;;  %960 = vmatmul.mubr.f32.vlgmr.msra.gmra.mrb[0].mxu1 %v300_v27 }
  0x7e   : > { %938 = vmatprep.mubr.f32.mxu0 %v285_v28  ;;  %962 = vmatprep.mubr.f32.mxu1 %v301_v29 }
  0x81   : > { %939 = vmatmul.mubr.f32.gmra.mrb[2].mxu0 %v286_v30  ;;  %963 = vmatmul.mubr.f32.gmra.mrb[2].mxu1 %v302_v31 }
  0x82   : > { %941 = vmatprep.mubr.f32.mxu0 %v287_v32  ;;  %965 = vmatprep.mubr.f32.mxu1 %v303_v33 }
  0x85   : > { %942 = vmatmul.mubr.f32.gmra.mrb[4].mxu0 %v288_v34  ;;  %966 = vmatmul.mubr.f32.gmra.mrb[4].mxu1 %v304_v35 }
  0x86   : > { %944 = vmatprep.mubr.f32.mxu0 %v289_v36  ;;  %968 = vmatprep.mubr.f32.mxu1 %v305_v37 }
  0x89   : > { %945 = vmatmul.mubr.f32.gmra.mrb[6].mxu0 %v290_v38  ;;  %969 = vmatmul.mubr.f32.gmra.mrb[6].mxu1 %v306_v39 }
  0x8a   : > { %947 = vmatprep.mubr.f32.mxu0 %v291_v40  ;;  %971 = vmatprep.mubr.f32.mxu1 %v307_v41 }
  0x8d   : > { %948 = vmatmul.mubr.f32.gmra.mrb[8].mxu0 %v292_v42  ;;  %972 = vmatmul.mubr.f32.gmra.mrb[8].mxu1 %v308_v43 }
  0x8e   : > { %950 = vmatprep.mubr.f32.mxu0 %v293_v44  ;;  %974 = vmatprep.mubr.f32.mxu1 %v309_v45 }
  0x91   : > { %951 = vmatmul.mubr.f32.gmra.mrb[10].mxu0 %v294_v46  ;;  %975 = vmatmul.mubr.f32.gmra.mrb[10].mxu1 %v310_v47 }
  0x92   : > { %953 = vmatprep.mubr.f32.mxu0 %v295_v48  ;;  %977 = vmatprep.mubr.f32.mxu1 %v311_v49 }
  0x95   : > { %954 = vmatmul.mubr.f32.gmra.mrb[12].mxu0 %v296_v50  ;;  %978 = vmatmul.mubr.f32.gmra.mrb[12].mxu1 %v312_v51 }
  0x96   : > { %956 = vmatprep.mubr.f32.mxu0 %v297_v52  ;;  %980 = vmatprep.mubr.f32.mxu1 %v313_v53 }
  0x99   : > { %957 = vmatmul.mubr.f32.gmra.mrb[14].mxu0 %v298_v54  ;;  %981 = vmatmul.mubr.f32.gmra.mrb[14].mxu1 %v314_v55 }
 0x150   : > { %v937_v56 = vpop.f32.mrb[0].mxu0  ;;  %v961_v57 = vpop.f32.mrb[0].mxu1 }
 0x151   : > { %v656_v58 = vmax.f32 %v937_v56, 0.0  ;;  %v672_v59 = vmax.f32 %v961_v57, 0.0  ;;  %v397_v60 = vpop.f32.mrb[1].mxu0  ;;  %v477_v61 = vpop.f32.mrb[1].mxu1 }
 0x152   : > { %v655_v62 = vmax.f32 %v397_v60, 0.0  ;;  %v671_v63 = vmax.f32 %v477_v61, 0.0 }
 0x153   : > { %688 = vst [vmem:[%s1484_s17 + $0x8] sm:$0xff] %v656_v58  ;;  %704 = vst [vmem:[%s1484_s17 + $0x88] sm:$0xff] %v672_v59 }
 0x154   : > { %687 = vst [vmem:[%s1484_s17] sm:$0xff] %v655_v62  ;;  %703 = vst [vmem:[%s1484_s17 + $0x80] sm:$0xff] %v671_v63  ;;  %v940_v0 = vpop.f32.mrb[2].mxu0  ;;  %v964_v1 = vpop.f32.mrb[2].mxu1 }
 0x155   : > { %v658_v2 = vmax.f32 %v940_v0, 0.0  ;;  %v674_v3 = vmax.f32 %v964_v1, 0.0  ;;  %v407_v4 = vpop.f32.mrb[3].mxu0  ;;  %v487_v5 = vpop.f32.mrb[3].mxu1 }
 0x156   : > { %v657_v6 = vmax.f32 %v407_v4, 0.0  ;;  %v673_v7 = vmax.f32 %v487_v5, 0.0 }
 0x157   : > { %690 = vst [vmem:[%s1484_s17 + $0x18] sm:$0xff] %v658_v2  ;;  %706 = vst [vmem:[%s1484_s17 + $0x98] sm:$0xff] %v674_v3 }
 0x158   : > { %689 = vst [vmem:[%s1484_s17 + $0x10] sm:$0xff] %v657_v6  ;;  %705 = vst [vmem:[%s1484_s17 + $0x90] sm:$0xff] %v673_v7  ;;  %v943_v8 = vpop.f32.mrb[4].mxu0  ;;  %v967_v9 = vpop.f32.mrb[4].mxu1 }
 0x159   : > { %v660_v10 = vmax.f32 %v943_v8, 0.0  ;;  %v676_v11 = vmax.f32 %v967_v9, 0.0  ;;  %v417_v12 = vpop.f32.mrb[5].mxu0  ;;  %v497_v13 = vpop.f32.mrb[5].mxu1 }
 0x15a   : > { %v659_v14 = vmax.f32 %v417_v12, 0.0  ;;  %v675_v15 = vmax.f32 %v497_v13, 0.0 }
 0x15b   : > { %692 = vst [vmem:[%s1484_s17 + $0x28] sm:$0xff] %v660_v10  ;;  %708 = vst [vmem:[%s1484_s17 + $0xa8] sm:$0xff] %v676_v11 }
 0x15c   : > { %691 = vst [vmem:[%s1484_s17 + $0x20] sm:$0xff] %v659_v14  ;;  %707 = vst [vmem:[%s1484_s17 + $0xa0] sm:$0xff] %v675_v15  ;;  %v946_v16 = vpop.f32.mrb[6].mxu0  ;;  %v970_v17 = vpop.f32.mrb[6].mxu1 }
 0x15d   : > { %v662_v18 = vmax.f32 %v946_v16, 0.0  ;;  %v678_v19 = vmax.f32 %v970_v17, 0.0  ;;  %v427_v20 = vpop.f32.mrb[7].mxu0  ;;  %v507_v21 = vpop.f32.mrb[7].mxu1 }
 0x15e   : > { %v661_v22 = vmax.f32 %v427_v20, 0.0  ;;  %v677_v23 = vmax.f32 %v507_v21, 0.0 }
 0x15f   : > { %694 = vst [vmem:[%s1484_s17 + $0x38] sm:$0xff] %v662_v18  ;;  %710 = vst [vmem:[%s1484_s17 + $0xb8] sm:$0xff] %v678_v19 }
 0x160   : > { %693 = vst [vmem:[%s1484_s17 + $0x30] sm:$0xff] %v661_v22  ;;  %709 = vst [vmem:[%s1484_s17 + $0xb0] sm:$0xff] %v677_v23  ;;  %v949_v24 = vpop.f32.mrb[8].mxu0  ;;  %v973_v25 = vpop.f32.mrb[8].mxu1 }
 0x161   : > { %v664_v26 = vmax.f32 %v949_v24, 0.0  ;;  %v680_v27 = vmax.f32 %v973_v25, 0.0  ;;  %v437_v28 = vpop.f32.mrb[9].mxu0  ;;  %v517_v29 = vpop.f32.mrb[9].mxu1 }
 0x162   : > { %v663_v30 = vmax.f32 %v437_v28, 0.0  ;;  %v679_v31 = vmax.f32 %v517_v29, 0.0 }
 0x163   : > { %696 = vst [vmem:[%s1484_s17 + $0x48] sm:$0xff] %v664_v26  ;;  %712 = vst [vmem:[%s1484_s17 + $0xc8] sm:$0xff] %v680_v27 }
 0x164   : > { %695 = vst [vmem:[%s1484_s17 + $0x40] sm:$0xff] %v663_v30  ;;  %711 = vst [vmem:[%s1484_s17 + $0xc0] sm:$0xff] %v679_v31  ;;  %v952_v32 = vpop.f32.mrb[10].mxu0  ;;  %v976_v33 = vpop.f32.mrb[10].mxu1 }
 0x165   : > { %v666_v34 = vmax.f32 %v952_v32, 0.0  ;;  %v682_v35 = vmax.f32 %v976_v33, 0.0  ;;  %v447_v36 = vpop.f32.mrb[11].mxu0  ;;  %v527_v37 = vpop.f32.mrb[11].mxu1 }
 0x166   : > { %v665_v38 = vmax.f32 %v447_v36, 0.0  ;;  %v681_v39 = vmax.f32 %v527_v37, 0.0 }
 0x167   : > { %698 = vst [vmem:[%s1484_s17 + $0x58] sm:$0xff] %v666_v34  ;;  %714 = vst [vmem:[%s1484_s17 + $0xd8] sm:$0xff] %v682_v35 }
 0x168   : > { %697 = vst [vmem:[%s1484_s17 + $0x50] sm:$0xff] %v665_v38  ;;  %713 = vst [vmem:[%s1484_s17 + $0xd0] sm:$0xff] %v681_v39  ;;  %v955_v40 = vpop.f32.mrb[12].mxu0  ;;  %v979_v41 = vpop.f32.mrb[12].mxu1 }
 0x169   : > { %v668_v42 = vmax.f32 %v955_v40, 0.0  ;;  %v684_v43 = vmax.f32 %v979_v41, 0.0  ;;  %v457_v44 = vpop.f32.mrb[13].mxu0  ;;  %v537_v45 = vpop.f32.mrb[13].mxu1 }
 0x16a   : > { %v667_v46 = vmax.f32 %v457_v44, 0.0  ;;  %v683_v47 = vmax.f32 %v537_v45, 0.0 }
 0x16b   : > { %700 = vst [vmem:[%s1484_s17 + $0x68] sm:$0xff] %v668_v42  ;;  %716 = vst [vmem:[%s1484_s17 + $0xe8] sm:$0xff] %v684_v43 }
 0x16c   : > { %699 = vst [vmem:[%s1484_s17 + $0x60] sm:$0xff] %v667_v46  ;;  %715 = vst [vmem:[%s1484_s17 + $0xe0] sm:$0xff] %v683_v47  ;;  %v958_v48 = vpop.f32.mrb[14].mxu0  ;;  %v982_v49 = vpop.f32.mrb[14].mxu1 }
 0x16d   : > { %v670_v50 = vmax.f32 %v958_v48, 0.0  ;;  %v686_v51 = vmax.f32 %v982_v49, 0.0  ;;  %v467_v52 = vpop.f32.mrb[15].mxu0  ;;  %v547_v53 = vpop.f32.mrb[15].mxu1 }
 0x16e   : > { %v669_v54 = vmax.f32 %v467_v52, 0.0  ;;  %v685_v55 = vmax.f32 %v547_v53, 0.0 }
 0x16f   : > { %702 = vst [vmem:[%s1484_s17 + $0x78] sm:$0xff] %v670_v50  ;;  %718 = vst [vmem:[%s1484_s17 + $0xf8] sm:$0xff] %v686_v51 }
 0x170   : > { %701 = vst [vmem:[%s1484_s17 + $0x70] sm:$0xff] %v669_v54  ;;  %717 = vst [vmem:[%s1484_s17 + $0xf0] sm:$0xff] %v685_v55 }
 0x171   : > { %1179 = shalt.err (!%p1176_p5)
}
 0x172   : > { %s1180_s23 = scalar_lea.hbm %s1519_s12, 4096  ;;  %s1184_s26 = scalar_lea.hbm %s1576_s2, 8192 }
 0x173   : > { %p1181_p9 = scmp.ne.s32.totalorder %s1519_s12, %s1180_s23  ;;  %p1185_p3 = scmp.lt.u32.totalorder %s1519_s12, %s1576_s2 }
 0x174   : > { %p1186_p7 = scmp.lt.u32.totalorder %s1184_s26, %s1180_s23  ;;  %p1188_p4 = scmp.lt.u32.totalorder %s1180_s23, %s1519_s12 }
 0x175   : > { %p1182_p1 = pnand %p1181_p9, %p1375_p10 }
 0x176   : > { %p1187_p13 = por %p1186_p7, %p1185_p3 }
 0x177   : > { %p1183_p2 = pneg %p1182_p1 }
 0x178   : > { %p1189_p6 = por %p1188_p4, %p1187_p13 }
 0x17a   : > { %p1190_p8 = pnand %p1189_p6, %p1183_p2 }
 0x17c   : > { %1193 = shalt.err (!%p1190_p8)
}
 0x17d   : > { %s1259_s8 = smov 128   ;;  %s1260_s17 = smov 8  }
 0x17e   : > { %1037 = dma.vmem_to_hbm [thread:$0]  (%p1375_p10), %s1521_s21, 4096, %s1519_s12, %s720_s4, %s1259_s8, %s1259_s8, %s1260_s17  }
 0x17f PF: > { %s749_s19 = sand.u32 1, %s1232_s9   ;;  %p1594_p12 = scmp.ne.s32.totalorder %s1584_s20, 0 }
 0x180   : > { %p1595_p11 = scmp.ge.s32.totalorder %s1252_s14, 2  ;;  %s750_s6 = scalar_lea.sflag [#allocation5], %s749_s19 }
 0x182   : > { %p1048_p0 = pnand %p1595_p11, %p1594_p12 }
 0x184   : > { %1227 = dma.done.wait (!%p1048_p0), %s750_s6, 4096  }
 0x185   : > { %1229 = vsyncadd (!%p1048_p0), %s750_s6, 4294963200  ;;  %s19_s14 = sadd.s32 1, %s1252_s14   ;;  %s1596_s9 = smov %s1236_s10 }
 0x186   : > { %p16_p5 = scmp.ge.s32.totalorder %s19_s14, 4   ;;  %s1597_s10 = smov %s1240_s11 }
 0x187   : > { %s1598_s11 = smov %s1384_s28  ;;  %s1599_s12 = smov %s1248_s13 }
 0x188   : > { %s1600_s13 = smov %s1602_s25  ;;  %18 = sbr.rel (!%p16_p5) target bundleno = 7 (0x7), region = 86 }
 0x18f   :  { %755 = vsyncpa [#allocation4], 1 }
 0x190   :  { %757 = vsyncpa [#allocation4 + $0x1], 1 }
 0x191   :  { %758 = vsyncpa [#allocation7], 1 }
 0x192   :  { %759 = vsyncpa [#allocation5], 1 }
 0x193   :  { %761 = vsyncpa [#allocation5 + $0x1], 1 }

</bundles_post_ra>
